<compile_context>
chip_gen: v7x
topology: tpu7x:2x2x1
jax: 0.10.0
libtpu: 0.0.40
codegen_flags: <defaults>
</compile_context>

<pallas_src>
import jax
import jax.numpy as jnp
from jax import lax
from jax.experimental import pallas as pl
from jax.experimental.pallas import tpu as pltpu

POOL_K = 5      # AvgPool kernel
POOL_S = 3      # AvgPool stride (cifar)
C_MID1 = 128    # first conv output channels
C_MID2 = 768    # second conv output channels
L_PAD = 128     # lane-dense padded classifier width
BN_EPS = 1e-5


def aux_head_kernel(x_ref, wc_ref, b1_ref, w2_ref, b2_ref, wf_ref, bf_ref,
                    o_ref):
    """Whole auxiliary head, whole batch, one grid step (3 MXU matmuls).

    x_ref : (N, C*H*W)  f32   flattened NCHW input
    wc_ref: (C*H*W, 512) bf16 fused (pool * conv1x1 * bn1_scale) weight
    b1_ref: (1, 512)     f32  bn1 bias, tiled over the 4 pooled positions
    w2_ref: (512, 768)   bf16 2x2-conv weight (flattened, bn2 scale folded)
    b2_ref: (1, 768)     f32  bn2 bias
    wf_ref: (768, 128)   bf16 classifier weight, zero-padded to 128 lanes
    bf_ref: (1, 128)     f32  classifier bias, zero-padded
    o_ref : (N, 128)     f32  padded logits
    """
    # ReLU on the raw input, then fused pool + 1x1 conv + BN1 scale as one dot.
    x = jnp.maximum(x_ref[...], 0.0).astype(jnp.bfloat16)
    h1 = jnp.dot(x, wc_ref[...], preferred_element_type=jnp.float32)   # (N,512)
    h1 = jnp.maximum(h1 + b1_ref[...], 0.0).astype(jnp.bfloat16)       # BN1 bias + ReLU

    # 2x2 conv over the 2x2 pooled grid == one deep-K matmul (BN2 scale folded).
    h2 = jnp.dot(h1, w2_ref[...], preferred_element_type=jnp.float32)  # (N,768)
    h2 = jnp.maximum(h2 + b2_ref[...], 0.0).astype(jnp.bfloat16)       # BN2 bias + ReLU

    # Lane-dense padded classifier: full (N, 128) unmasked store.
    logits = jnp.dot(h2, wf_ref[...],
                     preferred_element_type=jnp.float32) + bf_ref[...]
    o_ref[...] = logits


def _fuse_params(params, C, H, W):
    """Wrapper-side weight folding; keeps the original-layout params intact."""
    inv_area = 1.0 / float(POOL_K * POOL_K)
    # Pooling-window membership masks for the 2x2 pooled grid, p = ph*2 + pw.
    masks = []
    for ph in range(2):
        for pw in range(2):
            m = jnp.zeros((H, W), jnp.float32)
            m = m.at[ph * POOL_S: ph * POOL_S + POOL_K,
                     pw * POOL_S: pw * POOL_S + POOL_K].set(inv_area)
            masks.append(m)
    masks = jnp.stack(masks)                                   # (4, H, W)

    # Fold BN1 scale into the 1x1 conv, then fuse with the pooling masks.
    w1s = params["w1"] * params["s1"]                          # (C, 128)
    wcomb = jnp.einsum("phw,cj->chwpj", masks, w1s)            # rows: c*H*W+h*W+w
    wcomb = wcomb.reshape(C * H * W, 4 * C_MID1)               # cols: p*128+j
    b1t = jnp.tile(params["b1"], (1, 4))                       # (1, 512)

    # Flatten 2x2 conv (rows: p*128 + c_in) and fold BN2 scale into columns.
    w2f = params["w2"].reshape(4 * C_MID1, C_MID2) * params["s2"]   # (512, 768)
    b2 = params["b2"]                                               # (1, 768)

    # Pad classifier to a lane-dense 128-wide output.
    num_labels = params["wf"].shape[1]
    wfp = jnp.zeros((C_MID2, L_PAD), jnp.float32).at[:, :num_labels].set(params["wf"])
    bfp = jnp.zeros((1, L_PAD), jnp.float32).at[:, :num_labels].set(params["bf"])

    return (wcomb.astype(jnp.bfloat16), b1t.astype(jnp.float32),
            w2f.astype(jnp.bfloat16), b2.astype(jnp.float32),
            wfp.astype(jnp.bfloat16), bfp.astype(jnp.float32))


def auxiliary_head(x_nchw, params):
    n, C, H, W = x_nchw.shape
    assert H == 8 and W == 8, "cifar auxiliary head expects an 8x8 spatial input"
    num_labels = params["wf"].shape[1]

    # NCHW flatten is a pure reshape (W_comb rows are built in CHW order),
    # so no transpose op is needed in front of the kernel.
    x_flat = x_nchw.reshape(n, C * H * W).astype(jnp.float32)
    wcomb, b1t, w2f, b2, wfp, bfp = _fuse_params(params, C, H, W)

    vm = pl.BlockSpec(memory_space=pltpu.MemorySpace.VMEM)
    out = pl.pallas_call(
        aux_head_kernel,
        out_shape=jax.ShapeDtypeStruct((n, L_PAD), jnp.float32),
        in_specs=[vm] * 7,
        out_specs=vm,
    )(x_flat, wcomb, b1t, w2f, b2, wfp, bfp)
    return out[:, :num_labels]


def make_params(key, C, num_labels):
    ks = jax.random.split(key, 12)

    def bn_fold(kg, kb, km, kv, ch):
        gamma = 1.0 + 0.1 * jax.random.normal(kg, (ch,), jnp.float32)
        beta = 0.1 * jax.random.normal(kb, (ch,), jnp.float32)
        mean = 0.1 * jax.random.normal(km, (ch,), jnp.float32)
        var = jax.nn.softplus(jax.random.normal(kv, (ch,), jnp.float32)) + 0.5
        scale = gamma / jnp.sqrt(var + BN_EPS)
        bias = beta - mean * scale
        return scale.reshape(1, ch), bias.reshape(1, ch)

    w1 = 0.1 * jax.random.normal(ks[0], (C, C_MID1), jnp.float32)
    s1, b1 = bn_fold(ks[1], ks[2], ks[3], ks[4], C_MID1)
    # 2x2 conv weight, stored as (p=kh*2+kw, in=128, out=768)
    w2 = 0.05 * jax.random.normal(ks[5], (4, C_MID1, C_MID2), jnp.float32)
    s2, b2 = bn_fold(ks[6], ks[7], ks[8], ks[9], C_MID2)
    wf = 0.05 * jax.random.normal(ks[10], (C_MID2, num_labels), jnp.float32)
    bf = 0.1 * jax.random.normal(ks[11], (1, num_labels), jnp.float32)
    return dict(w1=w1, s1=s1, b1=b1, w2=w2, s2=s2, b2=b2, wf=wf, bf=bf)


def reference(x_nchw, params):
    """Pure-JAX (XLA) f32 reference using lax conv / reduce_window."""
    x = jnp.transpose(x_nchw, (0, 2, 3, 1)).astype(jnp.float32)    # NHWC
    x = jnp.maximum(x, 0.0)                                        # ReLU
    # AvgPool2d(5, stride=3, padding=0) -- no padding so count_include_pad moot
    summed = lax.reduce_window(x, 0.0, lax.add,
                               (1, POOL_K, POOL_K, 1),
                               (1, POOL_S, POOL_S, 1), "VALID")
    pooled = summed / float(POOL_K * POOL_K)                       # (N,2,2,C)
    dn = ("NHWC", "HWIO", "NHWC")
    w1 = params["w1"].reshape(1, 1, -1, C_MID1)
    h1 = lax.conv_general_dilated(pooled, w1, (1, 1), "VALID",
                                  dimension_numbers=dn)
    h1 = jnp.maximum(h1 * params["s1"].reshape(1, 1, 1, -1)
                     + params["b1"].reshape(1, 1, 1, -1), 0.0)
    w2 = params["w2"].reshape(2, 2, C_MID1, C_MID2)
    h2 = lax.conv_general_dilated(h1, w2, (1, 1), "VALID",
                                  dimension_numbers=dn)            # (N,1,1,768)
    h2 = jnp.maximum(h2 * params["s2"].reshape(1, 1, 1, -1)
                     + params["b2"].reshape(1, 1, 1, -1), 0.0)
    h2 = h2.reshape(h2.shape[0], -1)                               # flatten
    return h2 @ params["wf"] + params["bf"]                        # Linear


if __name__ == "__main__":
    key = jax.random.PRNGKey(0)
    kx, kp = jax.random.split(key)

    N, C, H, W = 2, 4, 8, 8          # cifar-style aux-head input (NCHW)
    NUM_LABELS = 10

    x = jax.random.normal(kx, (N, C, H, W), jnp.float32)
    params = make_params(kp, C, NUM_LABELS)

    out = jax.jit(auxiliary_head)(x, params)
    out = jax.block_until_ready(out)

    ref = reference(x, params)
    assert out.shape == (N, NUM_LABELS)
    # Tolerance loosened vs the pure-f32 path: kernel weights are bf16
    # (f32 accumulation), so expect ~1e-3..1e-2 absolute deviation on O(1) logits.
    assert jnp.allclose(out, ref, rtol=5e-2, atol=5e-2), (
        f"mismatch: max abs err {jnp.max(jnp.abs(out - ref))}")

    print("KERNEL_OK")
</pallas_src>

<mosaic_0001>
module attributes {stable_mosaic.version = 11 : i64} {
  func.func @aux_head_kernel(%arg0: memref<2x256xf32, #tpu.memory_space<vmem>>, %arg1: memref<256x512xbf16, #tpu.memory_space<vmem>>, %arg2: memref<1x512xf32, #tpu.memory_space<vmem>>, %arg3: memref<512x768xbf16, #tpu.memory_space<vmem>>, %arg4: memref<1x768xf32, #tpu.memory_space<vmem>>, %arg5: memref<768x128xbf16, #tpu.memory_space<vmem>>, %arg6: memref<1x128xf32, #tpu.memory_space<vmem>>, %arg7: memref<2x128xf32, #tpu.memory_space<vmem>>) attributes {dimension_semantics = [], scalar_prefetch = 0 : i64, scratch_operands = 0 : i64, tpu.core_type = #tpu.core_type<tc>} {
    %c0 = arith.constant 0 : index
    %c0_0 = arith.constant 0 : index
    %0 = vector.load %arg0[%c0, %c0_0] : memref<2x256xf32, #tpu.memory_space<vmem>>, vector<2x256xf32>
    %cst = arith.constant 0.000000e+00 : f32
    %1 = vector.broadcast %cst : f32 to vector<2x256xf32>
    %2 = arith.maximumf %0, %1 : vector<2x256xf32>
    %3 = arith.truncf %2 : vector<2x256xf32> to vector<2x256xbf16>
    %c0_1 = arith.constant 0 : index
    %c0_2 = arith.constant 0 : index
    %4 = vector.load %arg1[%c0_1, %c0_2] : memref<256x512xbf16, #tpu.memory_space<vmem>>, vector<256x512xbf16>
    %cst_3 = arith.constant dense<0.000000e+00> : vector<2x512xf32>
    %5 = tpu.matmul %3, %4, %cst_3 {dimension_numbers = #tpu.dot_dimension_numbers<[1], [0], [0], [1], [0, 0, 1, 1], [], []>} : vector<2x256xbf16>, vector<256x512xbf16>, vector<2x512xf32> -> vector<2x512xf32>
    %c0_4 = arith.constant 0 : index
    %c0_5 = arith.constant 0 : index
    %6 = vector.load %arg2[%c0_4, %c0_5] : memref<1x512xf32, #tpu.memory_space<vmem>>, vector<1x512xf32>
    %7 = vector.broadcast %6 : vector<1x512xf32> to vector<2x512xf32>
    %8 = arith.addf %5, %7 : vector<2x512xf32>
    %cst_6 = arith.constant 0.000000e+00 : f32
    %9 = vector.broadcast %cst_6 : f32 to vector<2x512xf32>
    %10 = arith.maximumf %8, %9 : vector<2x512xf32>
    %11 = arith.truncf %10 : vector<2x512xf32> to vector<2x512xbf16>
    %c0_7 = arith.constant 0 : index
    %c0_8 = arith.constant 0 : index
    %12 = vector.load %arg3[%c0_7, %c0_8] : memref<512x768xbf16, #tpu.memory_space<vmem>>, vector<512x768xbf16>
    %cst_9 = arith.constant dense<0.000000e+00> : vector<2x768xf32>
    %13 = tpu.matmul %11, %12, %cst_9 {dimension_numbers = #tpu.dot_dimension_numbers<[1], [0], [0], [1], [0, 0, 1, 1], [], []>} : vector<2x512xbf16>, vector<512x768xbf16>, vector<2x768xf32> -> vector<2x768xf32>
    %c0_10 = arith.constant 0 : index
    %c0_11 = arith.constant 0 : index
    %14 = vector.load %arg4[%c0_10, %c0_11] : memref<1x768xf32, #tpu.memory_space<vmem>>, vector<1x768xf32>
    %15 = vector.broadcast %14 : vector<1x768xf32> to vector<2x768xf32>
    %16 = arith.addf %13, %15 : vector<2x768xf32>
    %cst_12 = arith.constant 0.000000e+00 : f32
    %17 = vector.broadcast %cst_12 : f32 to vector<2x768xf32>
    %18 = arith.maximumf %16, %17 : vector<2x768xf32>
    %19 = arith.truncf %18 : vector<2x768xf32> to vector<2x768xbf16>
    %c0_13 = arith.constant 0 : index
    %c0_14 = arith.constant 0 : index
    %20 = vector.load %arg5[%c0_13, %c0_14] : memref<768x128xbf16, #tpu.memory_space<vmem>>, vector<768x128xbf16>
    %cst_15 = arith.constant dense<0.000000e+00> : vector<2x128xf32>
    %21 = tpu.matmul %19, %20, %cst_15 {dimension_numbers = #tpu.dot_dimension_numbers<[1], [0], [0], [1], [0, 0, 1, 1], [], []>} : vector<2x768xbf16>, vector<768x128xbf16>, vector<2x128xf32> -> vector<2x128xf32>
    %c0_16 = arith.constant 0 : index
    %c0_17 = arith.constant 0 : index
    %22 = vector.load %arg6[%c0_16, %c0_17] : memref<1x128xf32, #tpu.memory_space<vmem>>, vector<1x128xf32>
    %23 = vector.broadcast %22 : vector<1x128xf32> to vector<2x128xf32>
    %24 = arith.addf %21, %23 : vector<2x128xf32>
    %c0_18 = arith.constant 0 : index
    %c0_19 = arith.constant 0 : index
    %25 = vector.load %arg7[%c0_18, %c0_19] : memref<2x128xf32, #tpu.memory_space<vmem>>, vector<2x128xf32>
    tpu.vector_store %arg7[%c0_18, %c0_19], %24 {strides = array<i32>} : memref<2x128xf32, #tpu.memory_space<vmem>>, vector<2x128xf32>,
    return
  }
}

</mosaic_0001>

<bundles_post_ra>
// kernel: auxiliary_head.1
= control target key start
LH: loop header
LB: loop body
LE: loop exit
PB: predicated region body
PF: predicated region fallthrough
CT: control target
= control target key end

     0   :  { %v3354_v9 = vmov 1983009808   ;;  %v34_v11 = vlaneseq  ;;  %s4400_s0 = inlined_call_operand.vmem [shape: f32[2,256], index: 0, kind: input, shape index: {}]   ;;  %s4401_s1 = inlined_call_operand.vmem [shape: bf16[256,512], index: 1, kind: input, shape index: {}]   ;;  %s4402_s2 = inlined_call_operand.vmem [shape: f32[1,512], index: 2, kind: input, shape index: {}]   ;;  %s4403_s3 = inlined_call_operand.vmem [shape: bf16[512,768], index: 3, kind: input, shape index: {}]   ;;  %s4404_s4 = inlined_call_operand.vmem [shape: f32[1,768], index: 4, kind: input, shape index: {}]   ;;  %s4405_s5 = inlined_call_operand.vmem [shape: bf16[768,128], index: 5, kind: input, shape index: {}]   ;;  %s4406_s6 = inlined_call_operand.vmem [shape: f32[1,128], index: 6, kind: input, shape index: {}]   ;;  %s4407_s7 = inlined_call_operand.hbm [shape: f32[2,128], index: 7, kind: output, shape index: {}]  }
   0x1   :  { %v2898_v0 = vld [vmem:[%s4401_s1 + $0x4] ss:$16 sps:$4 sm:$0xff]   ;;  %v2900_v1 = vld [vmem:[%s4401_s1] ss:$16 sps:$4 sm:$0xff]   ;;  %v32_v10 = vunpack.c.l.s4 %v3354_v9  ;;  %v2946_v20 = vld [vmem:[%s4401_s1 + $0xc] ss:$16 sps:$4 sm:$0xff]  }
   0x2   :  { %449 = vmatprep.subr.bf16.mxu0 %v2898_v0  ;;  %v2901_v2 = vld [vmem:[%s4401_s1 + $0x24] ss:$16 sps:$4 sm:$0xff]   ;;  %v2903_v3 = vld [vmem:[%s4401_s1 + $0x20] ss:$16 sps:$4 sm:$0xff]   ;;  %v3429_v15 = vshrl.u32 %v34_v11, 7  ;;  %490 = vmatprep.subr.bf16.mxu1 %v2946_v20 }
   0x3   :  { %450 = vmatpush1.bf16.msra.mxu0 %v2900_v1  ;;  %v2904_v4 = vld [vmem:[%s4401_s1 + $0x44] ss:$16 sps:$4 sm:$0xff]   ;;  %v2906_v5 = vld [vmem:[%s4401_s1 + $0x40] ss:$16 sps:$4 sm:$0xff]   ;;  %v33_v14 = vunpack.c.0.s8 %v32_v10  ;;  %v2948_v21 = vld [vmem:[%s4401_s1 + $0x8] ss:$16 sps:$4 sm:$0xff]  }
   0x4   :  { %451 = vmatprep.subr.bf16.mxu0 %v2901_v2  ;;  %v2907_v6 = vld [vmem:[%s4401_s1 + $0x64] ss:$16 sps:$4 sm:$0xff]   ;;  %v2909_v7 = vld [vmem:[%s4401_s1 + $0x60] ss:$16 sps:$4 sm:$0xff]   ;;  %v2949_v24 = vld [vmem:[%s4401_s1 + $0x2c] ss:$16 sps:$4 sm:$0xff]   ;;  %491 = vmatpush1.bf16.msra.mxu1 %v2948_v21 }
   0x5   :  { %v2910_v8 = vld [vmem:[%s4401_s1 + $0x84] ss:$16 sps:$4 sm:$0xff]   ;;  %v2912_v12 = vld [vmem:[%s4401_s1 + $0x80] ss:$16 sps:$4 sm:$0xff]   ;;  %v36_v19 = vsub.s32 %v33_v14, %v3429_v15  ;;  %v2951_v27 = vld [vmem:[%s4401_s1 + $0x28] ss:$16 sps:$4 sm:$0xff]   ;;  %492 = vmatprep.subr.bf16.mxu1 %v2949_v24 }
   0x6   :  { %v2913_v13 = vld [vmem:[%s4401_s1 + $0xa4] ss:$16 sps:$4 sm:$0xff]   ;;  %v2915_v16 = vld [vmem:[%s4401_s1 + $0xa0] ss:$16 sps:$4 sm:$0xff]   ;;  %v2952_v28 = vld [vmem:[%s4401_s1 + $0x4c] ss:$16 sps:$4 sm:$0xff]  }
   0x7   :  { %452 = vmatpush1.bf16.msra.mxu0 %v2903_v3  ;;  %v2916_v17 = vld [vmem:[%s4401_s1 + $0xc4] ss:$16 sps:$4 sm:$0xff]   ;;  %v2918_v18 = vld [vmem:[%s4401_s1 + $0xc0] ss:$16 sps:$4 sm:$0xff]   ;;  %v2954_v33 = vld [vmem:[%s4401_s1 + $0x48] ss:$16 sps:$4 sm:$0xff]  }
   0x8   :  { %453 = vmatprep.subr.bf16.mxu0 %v2904_v4  ;;  %v28_v22 = vld [vmem:[%s4400_s0] sm:$0xf]  ;;  %v2919_v25 = vld [vmem:[%s4401_s1 + $0xe4] ss:$16 sps:$4 sm:$0xff]   ;;  %493 = vmatpush1.bf16.msra.mxu1 %v2951_v27  ;;  %v2955_v34 = vld [vmem:[%s4401_s1 + $0x6c] ss:$16 sps:$4 sm:$0xff]  }
   0x9   :  { %v29_v23 = vmax.f32 %v28_v22, 0.0  ;;  %v2921_v29 = vld [vmem:[%s4401_s1 + $0xe0] ss:$16 sps:$4 sm:$0xff]   ;;  %v2922_v31 = vld [vmem:[%s4401_s1 + $0x104] ss:$16 sps:$4 sm:$0xff]   ;;  %494 = vmatprep.subr.bf16.mxu1 %v2952_v28 }
   0xa   :  { %v2924_v35 = vld [vmem:[%s4401_s1 + $0x100] ss:$16 sps:$4 sm:$0xff]   ;;  %v2925_v36 = vld [vmem:[%s4401_s1 + $0x124] ss:$16 sps:$4 sm:$0xff]   ;;  %v2957_v37 = vld [vmem:[%s4401_s1 + $0x68] ss:$16 sps:$4 sm:$0xff]  }
   0xb   :  { %454 = vmatpush1.bf16.msra.mxu0 %v2906_v5  ;;  %v3456_v26 = vrot.slane %v29_v23, %v36_v19  ;;  %v2958_v38 = vld [vmem:[%s4401_s1 + $0x8c] ss:$16 sps:$4 sm:$0xff]   ;;  %v2927_v39 = vld [vmem:[%s4401_s1 + $0x120] ss:$16 sps:$4 sm:$0xff]   ;;  %v2928_v40 = vld [vmem:[%s4401_s1 + $0x144] ss:$16 sps:$4 sm:$0xff]  }
   0xc   :  { %455 = vmatprep.subr.bf16.mxu0 %v2907_v6  ;;  %495 = vmatpush1.bf16.msra.mxu1 %v2954_v33  ;;  %v2960_v41 = vld [vmem:[%s4401_s1 + $0x88] ss:$16 sps:$4 sm:$0xff]   ;;  %v2961_v42 = vld [vmem:[%s4401_s1 + $0xac] ss:$16 sps:$4 sm:$0xff]   ;;  %v2930_v43 = vld [vmem:[%s4401_s1 + $0x140] ss:$16 sps:$4 sm:$0xff]  }
   0xd   :  { %v38_v30 = vcombine.high %v3456_v26, %v3456_v26  ;;  %496 = vmatprep.subr.bf16.mxu1 %v2955_v34  ;;  %v2931_v44 = vld [vmem:[%s4401_s1 + $0x164] ss:$16 sps:$4 sm:$0xff]   ;;  %v2963_v45 = vld [vmem:[%s4401_s1 + $0xa8] ss:$16 sps:$4 sm:$0xff]   ;;  %v2964_v46 = vld [vmem:[%s4401_s1 + $0xcc] ss:$16 sps:$4 sm:$0xff]   ;;  %v41_v2 = vpack.c.bf16 %v3456_v26, %v3456_v26 }
   0xe   :  { %v2933_v47 = vld [vmem:[%s4401_s1 + $0x160] ss:$16 sps:$4 sm:$0xff]   ;;  %v2934_v48 = vld [vmem:[%s4401_s1 + $0x184] ss:$16 sps:$4 sm:$0xff]   ;;  %v2966_v49 = vld [vmem:[%s4401_s1 + $0xc8] ss:$16 sps:$4 sm:$0xff]  }
   0xf   :  { %456 = vmatpush1.bf16.msra.mxu0 %v2909_v7  ;;  %v42_v32 = vpack.c.bf16 %v38_v30, %v38_v30  ;;  %v2967_v50 = vld [vmem:[%s4401_s1 + $0xec] ss:$16 sps:$4 sm:$0xff]   ;;  %v2936_v51 = vld [vmem:[%s4401_s1 + $0x180] ss:$16 sps:$4 sm:$0xff]   ;;  %v2937_v52 = vld [vmem:[%s4401_s1 + $0x1a4] ss:$16 sps:$4 sm:$0xff]  }
  0x10   :  { %457 = vmatprep.subr.bf16.mxu0 %v2910_v8  ;;  %497 = vmatpush1.bf16.msra.mxu1 %v2957_v37  ;;  %v2969_v53 = vld [vmem:[%s4401_s1 + $0xe8] ss:$16 sps:$4 sm:$0xff]   ;;  %v2970_v54 = vld [vmem:[%s4401_s1 + $0x10c] ss:$16 sps:$4 sm:$0xff]   ;;  %v2939_v55 = vld [vmem:[%s4401_s1 + $0x1a0] ss:$16 sps:$4 sm:$0xff]  }
  0x11   :  { %481 = vmatprep.mubr.bf16.mxu0 %v42_v32  ;;  %522 = vmatprep.mubr.bf16.mxu1 %v42_v32  ;;  %v2940_v56 = vld [vmem:[%s4401_s1 + $0x1c4] ss:$16 sps:$4 sm:$0xff]   ;;  %v2972_v57 = vld [vmem:[%s4401_s1 + $0x108] ss:$16 sps:$4 sm:$0xff]   ;;  %v2973_v58 = vld [vmem:[%s4401_s1 + $0x12c] ss:$16 sps:$4 sm:$0xff]  }
  0x12   :  { %498 = vmatprep.subr.bf16.mxu1 %v2958_v38  ;;  %v2942_v59 = vld [vmem:[%s4401_s1 + $0x1c0] ss:$16 sps:$4 sm:$0xff]   ;;  %v2943_v60 = vld [vmem:[%s4401_s1 + $0x1e4] ss:$16 sps:$4 sm:$0xff]   ;;  %v2975_v61 = vld [vmem:[%s4401_s1 + $0x128] ss:$16 sps:$4 sm:$0xff]  }
  0x13   :  { %458 = vmatpush1.bf16.msra.mxu0 %v2912_v12  ;;  %v2976_v62 = vld [vmem:[%s4401_s1 + $0x14c] ss:$16 sps:$4 sm:$0xff]   ;;  %v2945_v63 = vld [vmem:[%s4401_s1 + $0x1e0] ss:$16 sps:$4 sm:$0xff]   ;;  %v2978_v1 = vld [vmem:[%s4401_s1 + $0x148] ss:$16 sps:$4 sm:$0xff]  }
  0x14   :  { %459 = vmatprep.subr.bf16.mxu0 %v2913_v13  ;;  %499 = vmatpush1.bf16.msra.mxu1 %v2960_v41  ;;  %v2996_v0 = vld [vmem:[%s4403_s3 + $0x4] ss:$24 sps:$4 sm:$0xff]   ;;  %v2994_v4 = vld [vmem:[%s4403_s3] ss:$24 sps:$4 sm:$0xff]   ;;  %v3002_v5 = vld [vmem:[%s4403_s3 + $0x34] ss:$24 sps:$4 sm:$0xff]  }
  0x15   :  { %500 = vmatprep.subr.bf16.mxu1 %v2961_v42  ;;  %v2979_v3 = vld [vmem:[%s4401_s1 + $0x16c] ss:$16 sps:$4 sm:$0xff]   ;;  %v2981_v6 = vld [vmem:[%s4401_s1 + $0x168] ss:$16 sps:$4 sm:$0xff]  }
  0x16   :  { %v2982_v7 = vld [vmem:[%s4401_s1 + $0x18c] ss:$16 sps:$4 sm:$0xff]   ;;  %v3000_v8 = vld [vmem:[%s4403_s3 + $0x30] ss:$24 sps:$4 sm:$0xff]   ;;  %v3006_v12 = vld [vmem:[%s4403_s3 + $0x60] ss:$24 sps:$4 sm:$0xff]  }
  0x17   :  { %460 = vmatpush1.bf16.msra.mxu0 %v2915_v16  ;;  %v3008_v9 = vld [vmem:[%s4403_s3 + $0x64] ss:$24 sps:$4 sm:$0xff]   ;;  %v2984_v10 = vld [vmem:[%s4401_s1 + $0x188] ss:$16 sps:$4 sm:$0xff]   ;;  %v3014_v13 = vld [vmem:[%s4403_s3 + $0x94] ss:$24 sps:$4 sm:$0xff]  }
  0x18   :  { %461 = vmatprep.subr.bf16.mxu0 %v2916_v17  ;;  %501 = vmatpush1.bf16.msra.mxu1 %v2963_v45  ;;  %v2985_v11 = vld [vmem:[%s4401_s1 + $0x1ac] ss:$16 sps:$4 sm:$0xff]   ;;  %v2987_v14 = vld [vmem:[%s4401_s1 + $0x1a8] ss:$16 sps:$4 sm:$0xff]  }
  0x19   :  { %502 = vmatprep.subr.bf16.mxu1 %v2964_v46  ;;  %v2988_v16 = vld [vmem:[%s4401_s1 + $0x1cc] ss:$16 sps:$4 sm:$0xff]   ;;  %v3012_v17 = vld [vmem:[%s4403_s3 + $0x90] ss:$24 sps:$4 sm:$0xff]   ;;  %v3018_v22 = vld [vmem:[%s4403_s3 + $0xc0] ss:$24 sps:$4 sm:$0xff]  }
  0x1a   :  { %v2990_v19 = vld [vmem:[%s4401_s1 + $0x1c8] ss:$16 sps:$4 sm:$0xff]   ;;  %v2991_v20 = vld [vmem:[%s4401_s1 + $0x1ec] ss:$16 sps:$4 sm:$0xff]  }
  0x1b   :  { %462 = vmatpush1.bf16.msra.mxu0 %v2918_v18  ;;  %v3020_v18 = vld [vmem:[%s4403_s3 + $0xc4] ss:$24 sps:$4 sm:$0xff]   ;;  %v2993_v21 = vld [vmem:[%s4401_s1 + $0x1e8] ss:$16 sps:$4 sm:$0xff]   ;;  %v3026_v24 = vld [vmem:[%s4403_s3 + $0xf4] ss:$24 sps:$4 sm:$0xff]  }
  0x1c   :  { %463 = vmatprep.subr.bf16.mxu0 %v2919_v25  ;;  %503 = vmatpush1.bf16.msra.mxu1 %v2966_v49  ;;  %v2999_v23 = vld [vmem:[%s4403_s3 + $0xc] ss:$24 sps:$4 sm:$0xff]   ;;  %v3024_v25 = vld [vmem:[%s4403_s3 + $0xf0] ss:$24 sps:$4 sm:$0xff]   ;;  %v3005_v28 = vld [vmem:[%s4403_s3 + $0x3c] ss:$24 sps:$4 sm:$0xff]  }
  0x1d   :  { %504 = vmatprep.subr.bf16.mxu1 %v2967_v50  ;;  %v3032_v26 = vld [vmem:[%s4403_s3 + $0x124] ss:$24 sps:$4 sm:$0xff]   ;;  %v2997_v27 = vld [vmem:[%s4403_s3 + $0x8] ss:$24 sps:$4 sm:$0xff]   ;;  %v3038_v30 = vld [vmem:[%s4403_s3 + $0x154] ss:$24 sps:$4 sm:$0xff]  }
  0x1e   :  { %v3011_v32 = vld [vmem:[%s4403_s3 + $0x6c] ss:$24 sps:$4 sm:$0xff]   ;;  %v3036_v33 = vld [vmem:[%s4403_s3 + $0x150] ss:$24 sps:$4 sm:$0xff]   ;;  %v3042_v37 = vld [vmem:[%s4403_s3 + $0x180] ss:$24 sps:$4 sm:$0xff]  }
  0x1f   :  { %464 = vmatpush1.bf16.msra.mxu0 %v2921_v29  ;;  %v3030_v29 = vld [vmem:[%s4403_s3 + $0x120] ss:$24 sps:$4 sm:$0xff]   ;;  %v3044_v34 = vld [vmem:[%s4403_s3 + $0x184] ss:$24 sps:$4 sm:$0xff]   ;;  %v3050_v38 = vld [vmem:[%s4403_s3 + $0x1b4] ss:$24 sps:$4 sm:$0xff]  }
  0x20   :  { %465 = vmatprep.subr.bf16.mxu0 %v2922_v31  ;;  %505 = vmatpush1.bf16.msra.mxu1 %v2969_v53  ;;  %v3003_v31 = vld [vmem:[%s4403_s3 + $0x38] ss:$24 sps:$4 sm:$0xff]   ;;  %v3056_v42 = vld [vmem:[%s4403_s3 + $0x1e4] ss:$24 sps:$4 sm:$0xff]   ;;  %v3062_v46 = vld [vmem:[%s4403_s3 + $0x214] ss:$24 sps:$4 sm:$0xff]  }
  0x21   :  { %506 = vmatprep.subr.bf16.mxu1 %v2970_v54  ;;  %v3048_v41 = vld [vmem:[%s4403_s3 + $0x1b0] ss:$24 sps:$4 sm:$0xff]   ;;  %v3054_v45 = vld [vmem:[%s4403_s3 + $0x1e0] ss:$24 sps:$4 sm:$0xff]   ;;  %v3068_v50 = vld [vmem:[%s4403_s3 + $0x244] ss:$24 sps:$4 sm:$0xff]  }
  0x22   :  { %v3060_v49 = vld [vmem:[%s4403_s3 + $0x210] ss:$24 sps:$4 sm:$0xff]   ;;  %v3066_v53 = vld [vmem:[%s4403_s3 + $0x240] ss:$24 sps:$4 sm:$0xff]   ;;  %v3074_v54 = vld [vmem:[%s4403_s3 + $0x274] ss:$24 sps:$4 sm:$0xff]  }
  0x23   :  { %466 = vmatpush1.bf16.msra.mxu0 %v2924_v35  ;;  %v3009_v35 = vld [vmem:[%s4403_s3 + $0x68] ss:$24 sps:$4 sm:$0xff]  }
  0x24   :  { %467 = vmatprep.subr.bf16.mxu0 %v2925_v36  ;;  %507 = vmatpush1.bf16.msra.mxu1 %v2972_v57  ;;  %v3017_v36 = vld [vmem:[%s4403_s3 + $0x9c] ss:$24 sps:$4 sm:$0xff]   ;;  %v3072_v57 = vld [vmem:[%s4403_s3 + $0x270] ss:$24 sps:$4 sm:$0xff]  }
  0x25   :  { %508 = vmatprep.subr.bf16.mxu1 %v2973_v58  ;;  %v3045_v58 = vld [vmem:[%s4403_s3 + $0x188] ss:$24 sps:$4 sm:$0xff]  }
  0x27   :  { %468 = vmatpush1.bf16.msra.mxu0 %v2927_v39  ;;  %v3015_v39 = vld [vmem:[%s4403_s3 + $0x98] ss:$24 sps:$4 sm:$0xff]  }
  0x28   :  { %469 = vmatprep.subr.bf16.mxu0 %v2928_v40  ;;  %509 = vmatpush1.bf16.msra.mxu1 %v2975_v61  ;;  %v3023_v40 = vld [vmem:[%s4403_s3 + $0xcc] ss:$24 sps:$4 sm:$0xff]  }
  0x29   :  { %510 = vmatprep.subr.bf16.mxu1 %v2976_v62  ;;  %v3059_v61 = vld [vmem:[%s4403_s3 + $0x1ec] ss:$24 sps:$4 sm:$0xff]   ;;  %v3057_v62 = vld [vmem:[%s4403_s3 + $0x1e8] ss:$24 sps:$4 sm:$0xff]  }
  0x2b   :  { %470 = vmatpush1.bf16.msra.mxu0 %v2930_v43  ;;  %v3021_v43 = vld [vmem:[%s4403_s3 + $0xc8] ss:$24 sps:$4 sm:$0xff]  }
  0x2c   :  { %471 = vmatprep.subr.bf16.mxu0 %v2931_v44  ;;  %511 = vmatpush1.bf16.msra.mxu1 %v2978_v1  ;;  %v3029_v44 = vld [vmem:[%s4403_s3 + $0xfc] ss:$24 sps:$4 sm:$0xff]   ;;  %v3071_v1 = vld [vmem:[%s4403_s3 + $0x24c] ss:$24 sps:$4 sm:$0xff]  }
  0x2d   :  { %512 = vmatprep.subr.bf16.mxu1 %v2979_v3  ;;  %v3077_v3 = vld [vmem:[%s4403_s3 + $0x27c] ss:$24 sps:$4 sm:$0xff]  }
  0x2f   :  { %472 = vmatpush1.bf16.msra.mxu0 %v2933_v47  ;;  %v3027_v47 = vld [vmem:[%s4403_s3 + $0xf8] ss:$24 sps:$4 sm:$0xff]  }
  0x30   :  { %473 = vmatprep.subr.bf16.mxu0 %v2934_v48  ;;  %513 = vmatpush1.bf16.msra.mxu1 %v2981_v6  ;;  %v3035_v48 = vld [vmem:[%s4403_s3 + $0x12c] ss:$24 sps:$4 sm:$0xff]  }
  0x31   :  { %514 = vmatprep.subr.bf16.mxu1 %v2982_v7  ;;  %v3083_v6 = vld [vmem:[%s4403_s3 + $0x2ac] ss:$24 sps:$4 sm:$0xff]   ;;  %v3078_v7 = vld [vmem:[%s4403_s3 + $0x2a0] ss:$24 sps:$4 sm:$0xff]  }
  0x33   :  { %474 = vmatpush1.bf16.msra.mxu0 %v2936_v51  ;;  %v3033_v51 = vld [vmem:[%s4403_s3 + $0x128] ss:$24 sps:$4 sm:$0xff]  }
  0x34   :  { %475 = vmatprep.subr.bf16.mxu0 %v2937_v52  ;;  %515 = vmatpush1.bf16.msra.mxu1 %v2984_v10  ;;  %v3041_v52 = vld [vmem:[%s4403_s3 + $0x15c] ss:$24 sps:$4 sm:$0xff]  }
  0x35   :  { %516 = vmatprep.subr.bf16.mxu1 %v2985_v11  ;;  %v3089_v10 = vld [vmem:[%s4403_s3 + $0x2dc] ss:$24 sps:$4 sm:$0xff]   ;;  %v3084_v11 = vld [vmem:[%s4403_s3 + $0x2d0] ss:$24 sps:$4 sm:$0xff]  }
  0x37   :  { %476 = vmatpush1.bf16.msra.mxu0 %v2939_v55  ;;  %v3039_v55 = vld [vmem:[%s4403_s3 + $0x158] ss:$24 sps:$4 sm:$0xff]  }
  0x38   :  { %477 = vmatprep.subr.bf16.mxu0 %v2940_v56  ;;  %517 = vmatpush1.bf16.msra.mxu1 %v2987_v14  ;;  %v3047_v56 = vld [vmem:[%s4403_s3 + $0x18c] ss:$24 sps:$4 sm:$0xff]  }
  0x39   :  { %518 = vmatprep.subr.bf16.mxu1 %v2988_v16  ;;  %v3095_v14 = vld [vmem:[%s4403_s3 + $0x30c] ss:$24 sps:$4 sm:$0xff]  }
  0x3b   :  { %478 = vmatpush1.bf16.msra.mxu0 %v2942_v59  ;;  %v3053_v59 = vld [vmem:[%s4403_s3 + $0x1bc] ss:$24 sps:$4 sm:$0xff]  }
  0x3c   :  { %479 = vmatprep.subr.bf16.mxu0 %v2943_v60  ;;  %519 = vmatpush1.bf16.msra.mxu1 %v2990_v19  ;;  %v3051_v60 = vld [vmem:[%s4403_s3 + $0x1b8] ss:$24 sps:$4 sm:$0xff]  }
  0x3d   :  { %520 = vmatprep.subr.bf16.mxu1 %v2991_v20 }
  0x3f   :  { %480 = vmatpush1.bf16.msra.mxu0 %v2945_v63  ;;  %v3065_v63 = vld [vmem:[%s4403_s3 + $0x21c] ss:$24 sps:$4 sm:$0xff]  }
  0x40   :  { %1723 = vmatprep.subr.bf16.mxu0 %v2996_v0  ;;  %521 = vmatpush1.bf16.msra.mxu1 %v2993_v21  ;;  %v3063_v0 = vld [vmem:[%s4403_s3 + $0x218] ss:$24 sps:$4 sm:$0xff]  }
  0x41   :  { %1805 = vmatprep.subr.bf16.mxu1 %v2999_v23 }
  0x42   :  { %482 = vmatmul.mubr.bf16.vlgmr.msra.gmra.mrb[0].mxu0 %v41_v2 }
  0x43   :  { %1724 = vmatpush1.bf16.msra.mxu0 %v2994_v4  ;;  %523 = vmatmul.mubr.bf16.vlgmr.msra.gmra.mrb[0].mxu1 %v41_v2  ;;  %v3069_v2 = vld [vmem:[%s4403_s3 + $0x248] ss:$24 sps:$4 sm:$0xff]   ;;  %v3075_v4 = vld [vmem:[%s4403_s3 + $0x278] ss:$24 sps:$4 sm:$0xff]  }
  0x44   :  { %1725 = vmatprep.subr.bf16.mxu0 %v3002_v5  ;;  %1806 = vmatpush1.bf16.msra.mxu1 %v2997_v27  ;;  %v3080_v5 = vld [vmem:[%s4403_s3 + $0x2a4] ss:$24 sps:$4 sm:$0xff]  }
  0x45   :  { %1807 = vmatprep.subr.bf16.mxu1 %v3005_v28 }
  0x47   :  { %1726 = vmatpush1.bf16.msra.mxu0 %v3000_v8  ;;  %v3081_v8 = vld [vmem:[%s4403_s3 + $0x2a8] ss:$24 sps:$4 sm:$0xff]  }
  0x48   :  { %1727 = vmatprep.subr.bf16.mxu0 %v3008_v9  ;;  %1808 = vmatpush1.bf16.msra.mxu1 %v3003_v31  ;;  %v3086_v9 = vld [vmem:[%s4403_s3 + $0x2d4] ss:$24 sps:$4 sm:$0xff]  }
  0x49   :  { %1809 = vmatprep.subr.bf16.mxu1 %v3011_v32 }
  0x4b   :  { %1728 = vmatpush1.bf16.msra.mxu0 %v3006_v12  ;;  %v3087_v12 = vld [vmem:[%s4403_s3 + $0x2d8] ss:$24 sps:$4 sm:$0xff]  }
  0x4c   :  { %1729 = vmatprep.subr.bf16.mxu0 %v3014_v13  ;;  %1810 = vmatpush1.bf16.msra.mxu1 %v3009_v35  ;;  %v3092_v13 = vld [vmem:[%s4403_s3 + $0x304] ss:$24 sps:$4 sm:$0xff]  }
  0x4d   :  { %1811 = vmatprep.subr.bf16.mxu1 %v3017_v36 }
  0x4f   :  { %1730 = vmatpush1.bf16.msra.mxu0 %v3012_v17 }
  0x50   :  { %1731 = vmatprep.subr.bf16.mxu0 %v3020_v18  ;;  %1812 = vmatpush1.bf16.msra.mxu1 %v3015_v39 }
  0x51   :  { %1813 = vmatprep.subr.bf16.mxu1 %v3023_v40 }
  0x53   :  { %1732 = vmatpush1.bf16.msra.mxu0 %v3018_v22 }
  0x54   :  { %1733 = vmatprep.subr.bf16.mxu0 %v3026_v24  ;;  %1814 = vmatpush1.bf16.msra.mxu1 %v3021_v43 }
  0x55   :  { %1815 = vmatprep.subr.bf16.mxu1 %v3029_v44 }
  0x57   :  { %1734 = vmatpush1.bf16.msra.mxu0 %v3024_v25 }
  0x58   :  { %1735 = vmatprep.subr.bf16.mxu0 %v3032_v26  ;;  %1816 = vmatpush1.bf16.msra.mxu1 %v3027_v47 }
  0x59   :  { %1817 = vmatprep.subr.bf16.mxu1 %v3035_v48 }
  0x5b   :  { %1736 = vmatpush1.bf16.msra.mxu0 %v3030_v29 }
  0x5c   :  { %1737 = vmatprep.subr.bf16.mxu0 %v3038_v30  ;;  %1818 = vmatpush1.bf16.msra.mxu1 %v3033_v51 }
  0x5d   :  { %1819 = vmatprep.subr.bf16.mxu1 %v3041_v52 }
  0x5f   :  { %1738 = vmatpush1.bf16.msra.mxu0 %v3036_v33 }
  0x60   :  { %1739 = vmatprep.subr.bf16.mxu0 %v3044_v34  ;;  %1820 = vmatpush1.bf16.msra.mxu1 %v3039_v55 }
  0x61   :  { %1821 = vmatprep.subr.bf16.mxu1 %v3047_v56 }
  0x63   :  { %1740 = vmatpush1.bf16.msra.mxu0 %v3042_v37 }
  0x64   :  { %1741 = vmatprep.subr.bf16.mxu0 %v3050_v38  ;;  %1822 = vmatpush1.bf16.msra.mxu1 %v3045_v58 }
  0x65   :  { %1823 = vmatprep.subr.bf16.mxu1 %v3053_v59 }
  0x67   :  { %1742 = vmatpush1.bf16.msra.mxu0 %v3048_v41 }
  0x68   :  { %1743 = vmatprep.subr.bf16.mxu0 %v3056_v42  ;;  %1824 = vmatpush1.bf16.msra.mxu1 %v3051_v60 }
  0x69   :  { %1825 = vmatprep.subr.bf16.mxu1 %v3059_v61 }
  0x6b   :  { %1744 = vmatpush1.bf16.msra.mxu0 %v3054_v45 }
  0x6c   :  { %1745 = vmatprep.subr.bf16.mxu0 %v3062_v46  ;;  %1826 = vmatpush1.bf16.msra.mxu1 %v3057_v62 }
  0x6d   :  { %1827 = vmatprep.subr.bf16.mxu1 %v3065_v63 }
  0x6f   :  { %1746 = vmatpush1.bf16.msra.mxu0 %v3060_v49 }
  0x70   :  { %1747 = vmatprep.subr.bf16.mxu0 %v3068_v50  ;;  %1828 = vmatpush1.bf16.msra.mxu1 %v3063_v0 }
  0x71   :  { %1829 = vmatprep.subr.bf16.mxu1 %v3071_v1 }
  0x73   :  { %1748 = vmatpush1.bf16.msra.mxu0 %v3066_v53 }
  0x74   :  { %1749 = vmatprep.subr.bf16.mxu0 %v3074_v54  ;;  %1830 = vmatpush1.bf16.msra.mxu1 %v3069_v2 }
  0x75   :  { %1831 = vmatprep.subr.bf16.mxu1 %v3077_v3 }
  0x77   :  { %1750 = vmatpush1.bf16.msra.mxu0 %v3072_v57 }
  0x78   :  { %1832 = vmatpush1.bf16.msra.mxu1 %v3075_v4  ;;  %1751 = vmatprep.subr.bf16.mxu0 %v3080_v5 }
  0x79   :  { %1833 = vmatprep.subr.bf16.mxu1 %v3083_v6 }
  0x7b   :  { %1752 = vmatpush1.bf16.msra.mxu0 %v3078_v7 }
  0x7c   :  { %1834 = vmatpush1.bf16.msra.mxu1 %v3081_v8  ;;  %1753 = vmatprep.subr.bf16.mxu0 %v3086_v9 }
  0x7d   :  { %1835 = vmatprep.subr.bf16.mxu1 %v3089_v10 }
  0x7f   :  { %1754 = vmatpush1.bf16.msra.mxu0 %v3084_v11 }
  0x80   :  { %1836 = vmatpush1.bf16.msra.mxu1 %v3087_v12  ;;  %1764 = vmatprep.subr.bf16.mxu0 %v3092_v13 }
  0x81   :  { %1846 = vmatprep.subr.bf16.mxu1 %v3095_v14 }
  0x82   :  { %12 = vsyncpa [#allocation3], 0  ;;  %v111_v16 = vsub.s32 0, %v3429_v15  ;;  %v3802_v17 = vld [vmem:[%s4402_s2] sm:$0xf]  ;;  %v115_v18 = vsub.s32 1, %v3429_v15 }
  0x83   :  { %v3090_v30 = vld [vmem:[%s4403_s3 + $0x300] ss:$24 sps:$4 sm:$0xff]   ;;  %v3098_v33 = vld [vmem:[%s4403_s3 + $0x334] ss:$24 sps:$4 sm:$0xff]   ;;  %v3096_v35 = vld [vmem:[%s4403_s3 + $0x330] ss:$24 sps:$4 sm:$0xff]  }
  0x84   :  { %v112_v19 = vrot.slane %v3802_v17, %v111_v16  ;;  %v116_v20 = vrot.slane %v3802_v17, %v115_v18  ;;  %v3093_v31 = vld [vmem:[%s4403_s3 + $0x308] ss:$24 sps:$4 sm:$0xff]   ;;  %v3101_v34 = vld [vmem:[%s4403_s3 + $0x33c] ss:$24 sps:$4 sm:$0xff]   ;;  %v3099_v36 = vld [vmem:[%s4403_s3 + $0x338] ss:$24 sps:$4 sm:$0xff]  }
  0x85   :  { %v3104_v37 = vld [vmem:[%s4403_s3 + $0x364] ss:$24 sps:$4 sm:$0xff]   ;;  %v3102_v39 = vld [vmem:[%s4403_s3 + $0x360] ss:$24 sps:$4 sm:$0xff]   ;;  %v3110_v41 = vld [vmem:[%s4403_s3 + $0x394] ss:$24 sps:$4 sm:$0xff]  }
  0x86   :  { %v3107_v38 = vld [vmem:[%s4403_s3 + $0x36c] ss:$24 sps:$4 sm:$0xff]   ;;  %v3105_v40 = vld [vmem:[%s4403_s3 + $0x368] ss:$24 sps:$4 sm:$0xff]   ;;  %v3113_v42 = vld [vmem:[%s4403_s3 + $0x39c] ss:$24 sps:$4 sm:$0xff]  }
  0x87   :  { %v123_v43 = vsub.s32 3, %v3429_v15  ;;  %v3108_v44 = vld [vmem:[%s4403_s3 + $0x390] ss:$24 sps:$4 sm:$0xff]   ;;  %v3116_v46 = vld [vmem:[%s4403_s3 + $0x3c4] ss:$24 sps:$4 sm:$0xff]   ;;  %s3355_s26 = smov [#allocation2]  }
  0x88   :  { %v3111_v45 = vld [vmem:[%s4403_s3 + $0x398] ss:$24 sps:$4 sm:$0xff]   ;;  %v3119_v47 = vld [vmem:[%s4403_s3 + $0x3cc] ss:$24 sps:$4 sm:$0xff]   ;;  %v3117_v50 = vld [vmem:[%s4403_s3 + $0x3c8] ss:$24 sps:$4 sm:$0xff]  }
  0x89   :  { %v124_v48 = vrot.slane %v3802_v17, %v123_v43  ;;  %v3114_v49 = vld [vmem:[%s4403_s3 + $0x3c0] ss:$24 sps:$4 sm:$0xff]   ;;  %v3122_v52 = vld [vmem:[%s4403_s3 + $0x3f4] ss:$24 sps:$4 sm:$0xff]   ;;  %v3120_v58 = vld [vmem:[%s4403_s3 + $0x3f0] ss:$24 sps:$4 sm:$0xff]  }
  0x8a   :  { %v3125_v53 = vld [vmem:[%s4403_s3 + $0x3fc] ss:$24 sps:$4 sm:$0xff]   ;;  %v3123_v59 = vld [vmem:[%s4403_s3 + $0x3f8] ss:$24 sps:$4 sm:$0xff]   ;;  %v3131_v62 = vld [vmem:[%s4403_s3 + $0x42c] ss:$24 sps:$4 sm:$0xff]  }
  0x8b   :  { %v3128_v61 = vld [vmem:[%s4403_s3 + $0x424] ss:$24 sps:$4 sm:$0xff]   ;;  %v3126_v0 = vld [vmem:[%s4403_s3 + $0x420] ss:$24 sps:$4 sm:$0xff]   ;;  %v3134_v2 = vld [vmem:[%s4403_s3 + $0x454] ss:$24 sps:$4 sm:$0xff]  }
  0x8c   :  { %v3129_v1 = vld [vmem:[%s4403_s3 + $0x428] ss:$24 sps:$4 sm:$0xff]   ;;  %v3137_v3 = vld [vmem:[%s4403_s3 + $0x45c] ss:$24 sps:$4 sm:$0xff]   ;;  %v3135_v5 = vld [vmem:[%s4403_s3 + $0x458] ss:$24 sps:$4 sm:$0xff]  }
  0x8d   :  { %v3132_v4 = vld [vmem:[%s4403_s3 + $0x450] ss:$24 sps:$4 sm:$0xff]   ;;  %v3140_v6 = vld [vmem:[%s4403_s3 + $0x484] ss:$24 sps:$4 sm:$0xff]   ;;  %v3138_v8 = vld [vmem:[%s4403_s3 + $0x480] ss:$24 sps:$4 sm:$0xff]  }
  0x8e   :  { %v3143_v7 = vld [vmem:[%s4403_s3 + $0x48c] ss:$24 sps:$4 sm:$0xff]   ;;  %v3141_v9 = vld [vmem:[%s4403_s3 + $0x488] ss:$24 sps:$4 sm:$0xff]   ;;  %v3149_v11 = vld [vmem:[%s4403_s3 + $0x4bc] ss:$24 sps:$4 sm:$0xff]  }
  0x8f   :  { %v3146_v10 = vld [vmem:[%s4403_s3 + $0x4b4] ss:$24 sps:$4 sm:$0xff]   ;;  %v3144_v12 = vld [vmem:[%s4403_s3 + $0x4b0] ss:$24 sps:$4 sm:$0xff]   ;;  %v3152_v14 = vld [vmem:[%s4403_s3 + $0x4e4] ss:$24 sps:$4 sm:$0xff]  }
  0x90   :  { %v3147_v13 = vld [vmem:[%s4403_s3 + $0x4b8] ss:$24 sps:$4 sm:$0xff]   ;;  %s2499_s27 = sshll.u32 %s3355_s26, 4  ;;  %s2500_s27 = int_to_ptr.vmem [resolvable:$true] %s2499_s27 }
  0x91   :  { %s3330_s28 = scalar_lea.vmem %s2500_s27, 32  ;;  %p3335_p1 = scmp.lt.s32.totalorder %s2500_s27, %s2500_s27 }
  0x92   :  { %p3331_p0 = scmp.ne.s32.totalorder %s2500_s27, %s3330_s28  ;;  %p3336_p2 = scmp.lt.s32.totalorder %s3330_s28, %s3330_s28 }
  0x94   :  { %p3337_p3 = por %p3336_p2, %p3335_p1 }
  0x96   :  { %p3338_p4 = pnand %p3337_p3, %p3331_p0 }
 0x115   :  { %v483_v21 = vpop.f32.mrb[0].mxu0 }
 0x116   :  { %v484_v22 = vadd.f32 %v483_v21, %v112_v19  ;;  %v485_v23 = vpop.f32.mrb[1].mxu0  ;;  %v3877_v51 = vpop.f32.mrb[0].mxu1  ;;  %v3155_v19 = vld [vmem:[%s4403_s3 + $0x4ec] ss:$24 sps:$4 sm:$0xff]   ;;  %v3153_v21 = vld [vmem:[%s4403_s3 + $0x4e8] ss:$24 sps:$4 sm:$0xff]  }
 0x117   :  { %v486_v24 = vadd.f32 %v485_v23, %v116_v20  ;;  %v487_v25 = vpop.f32.mrb[2].mxu0  ;;  %v526_v54 = vpop.f32.mrb[1].mxu1  ;;  %v3150_v20 = vld [vmem:[%s4403_s3 + $0x4e0] ss:$24 sps:$4 sm:$0xff]   ;;  %v3161_v23 = vld [vmem:[%s4403_s3 + $0x51c] ss:$24 sps:$4 sm:$0xff]  }
 0x118   :  { %v531_v26 = vmax.f32 %v484_v22, 0.0  ;;  %v488_v27 = vpop.f32.mrb[3].mxu0  ;;  %v527_v55 = vadd.f32 %v526_v54, %v124_v48  ;;  %v528_v56 = vpop.f32.mrb[2].mxu1  ;;  %v3158_v22 = vld [vmem:[%s4403_s3 + $0x514] ss:$24 sps:$4 sm:$0xff]  }
 0x119   :  { %v532_v28 = vmax.f32 %v486_v24, 0.0  ;;  %v529_v57 = vpop.f32.mrb[3].mxu1  ;;  %v3156_v24 = vld [vmem:[%s4403_s3 + $0x510] ss:$24 sps:$4 sm:$0xff]   ;;  %v3167_v27 = vld [vmem:[%s4403_s3 + $0x54c] ss:$24 sps:$4 sm:$0xff]  }
 0x11a   :  { %v3819_v32 = vpack.c.bf16 %v531_v26, %v531_v26  ;;  %v534_v60 = vmax.f32 %v527_v55, 0.0  ;;  %v3159_v25 = vld [vmem:[%s4403_s3 + $0x518] ss:$24 sps:$4 sm:$0xff]   ;;  %v3164_v26 = vld [vmem:[%s4403_s3 + $0x544] ss:$24 sps:$4 sm:$0xff]   ;;  %v3284_v54 = vld [vmem:[%s4405_s5 + $0x48] sm:$0xff]  }
 0x11b   :  { %v3811_v29 = vpack.c.bf16 %v532_v28, %v532_v28  ;;  %v119_v28 = vsub.s32 2, %v3429_v15  ;;  %v3188_v48 = vld [vmem:[%s4403_s3 + $0x14] ss:$24 sps:$4 sm:$0xff]   ;;  %v3189_v55 = vld [vmem:[%s4403_s3 + $0x40] ss:$24 sps:$4 sm:$0xff]  }
 0x11c   :  { %v3897_v63 = vpack.c.bf16 %v534_v60, %v534_v60  ;;  %v3194_v56 = vld [vmem:[%s4403_s3 + $0x74] ss:$24 sps:$4 sm:$0xff]  }
 0x11d   :  { %1755 = vmatprep.mubr.bf16.mxu0 %v3811_v29  ;;  %1837 = vmatprep.mubr.bf16.mxu1 %v3811_v29  ;;  %v3285_v57 = vld [vmem:[%s4405_s5 + $0x8] sm:$0xff]   ;;  %v3287_v60 = vld [vmem:[%s4405_s5 + $0x10] sm:$0xff]  }
 0x11e   :  { %1756 = vmatmul.mubr.bf16.vlgmr.msra.gmra.mrb[4].mxu0 %v3819_v32  ;;  %1838 = vmatmul.mubr.bf16.vlgmr.msra.gmra.mrb[4].mxu1 %v3819_v32 }
 0x11f   :  { %1765 = vmatpush1.bf16.msra.mxu0 %v3090_v30  ;;  %1847 = vmatpush1.bf16.msra.mxu1 %v3093_v31  ;;  %v3162_v30 = vld [vmem:[%s4403_s3 + $0x540] ss:$24 sps:$4 sm:$0xff]  }
 0x120   :  { %1766 = vmatprep.subr.bf16.mxu0 %v3098_v33  ;;  %1848 = vmatprep.subr.bf16.mxu1 %v3101_v34  ;;  %v3165_v31 = vld [vmem:[%s4403_s3 + $0x548] ss:$24 sps:$4 sm:$0xff]   ;;  %v3170_v33 = vld [vmem:[%s4403_s3 + $0x574] ss:$24 sps:$4 sm:$0xff]  }
 0x121   :  { %1796 = vmatprep.mubr.bf16.mxu0 %v3897_v63  ;;  %1878 = vmatprep.mubr.bf16.mxu1 %v3897_v63  ;;  %v3173_v34 = vld [vmem:[%s4403_s3 + $0x57c] ss:$24 sps:$4 sm:$0xff]  }
 0x123   :  { %1767 = vmatpush1.bf16.msra.mxu0 %v3096_v35  ;;  %1849 = vmatpush1.bf16.msra.mxu1 %v3099_v36  ;;  %v120_v35 = vrot.slane %v3802_v17, %v119_v28  ;;  %v3168_v36 = vld [vmem:[%s4403_s3 + $0x570] ss:$24 sps:$4 sm:$0xff]   ;;  %v3179_v17 = vld [vmem:[%s4403_s3 + $0x5ac] ss:$24 sps:$4 sm:$0xff]  }
 0x124   :  { %1768 = vmatprep.subr.bf16.mxu0 %v3104_v37  ;;  %1850 = vmatprep.subr.bf16.mxu1 %v3107_v38  ;;  %v3171_v37 = vld [vmem:[%s4403_s3 + $0x578] ss:$24 sps:$4 sm:$0xff]   ;;  %v3176_v38 = vld [vmem:[%s4403_s3 + $0x5a4] ss:$24 sps:$4 sm:$0xff]  }
 0x127   :  { %1769 = vmatpush1.bf16.msra.mxu0 %v3102_v39  ;;  %1851 = vmatpush1.bf16.msra.mxu1 %v3105_v40  ;;  %v525_v39 = vadd.f32 %v3877_v51, %v120_v35  ;;  %v3174_v40 = vld [vmem:[%s4403_s3 + $0x5a0] ss:$24 sps:$4 sm:$0xff]   ;;  %v3191_v51 = vld [vmem:[%s4403_s3 + $0x44] ss:$24 sps:$4 sm:$0xff]  }
 0x128   :  { %1770 = vmatprep.subr.bf16.mxu0 %v3110_v41  ;;  %1852 = vmatprep.subr.bf16.mxu1 %v3113_v42  ;;  %v3177_v41 = vld [vmem:[%s4403_s3 + $0x5a8] ss:$24 sps:$4 sm:$0xff]   ;;  %v3182_v42 = vld [vmem:[%s4403_s3 + $0x5d4] ss:$24 sps:$4 sm:$0xff]  }
 0x129   :  { %v3231_v35 = vld [vmem:[%s4403_s3 + $0x2e0] ss:$24 sps:$4 sm:$0xff]  }
 0x12b   :  { %1771 = vmatpush1.bf16.msra.mxu0 %v3108_v44  ;;  %1853 = vmatpush1.bf16.msra.mxu1 %v3111_v45  ;;  %v3185_v44 = vld [vmem:[%s4403_s3 + $0x5dc] ss:$24 sps:$4 sm:$0xff]   ;;  %v533_v45 = vmax.f32 %v525_v39, 0.0 }
 0x12c   :  { %1772 = vmatprep.subr.bf16.mxu0 %v3116_v46  ;;  %1854 = vmatprep.subr.bf16.mxu1 %v3119_v47  ;;  %v3180_v46 = vld [vmem:[%s4403_s3 + $0x5d0] ss:$24 sps:$4 sm:$0xff]   ;;  %v3242_v39 = vld [vmem:[%s4403_s3 + $0x374] ss:$24 sps:$4 sm:$0xff]  }
 0x12d   :  { %v3183_v47 = vld [vmem:[%s4403_s3 + $0x5d8] ss:$24 sps:$4 sm:$0xff]  }
 0x12f   :  { %1773 = vmatpush1.bf16.msra.mxu0 %v3114_v49  ;;  %1855 = vmatpush1.bf16.msra.mxu1 %v3117_v50  ;;  %v4023_v49 = vpack.c.bf16 %v533_v45, %v533_v45  ;;  %v3186_v50 = vld [vmem:[%s4403_s3 + $0x10] ss:$24 sps:$4 sm:$0xff]   ;;  %v3249_v45 = vld [vmem:[%s4403_s3 + $0x400] ss:$24 sps:$4 sm:$0xff]  }
 0x130   :  { %1774 = vmatprep.subr.bf16.mxu0 %v3122_v52  ;;  %1856 = vmatprep.subr.bf16.mxu1 %v3125_v53  ;;  %v3282_v52 = vld [vmem:[%s4405_s5 + $0x40] sm:$0xff]  }
 0x131   :  { %v3283_v53 = vld [vmem:[%s4405_s5] sm:$0xff]  }
 0x133   :  { %1775 = vmatpush1.bf16.msra.mxu0 %v3120_v58  ;;  %1857 = vmatpush1.bf16.msra.mxu1 %v3123_v59  ;;  %v3192_v58 = vld [vmem:[%s4403_s3 + $0x70] ss:$24 sps:$4 sm:$0xff]   ;;  %v3197_v59 = vld [vmem:[%s4403_s3 + $0xa4] ss:$24 sps:$4 sm:$0xff]  }
 0x134   :  { %1776 = vmatprep.subr.bf16.mxu0 %v3128_v61  ;;  %1858 = vmatprep.subr.bf16.mxu1 %v3131_v62  ;;  %v3288_v61 = vld [vmem:[%s4405_s5 + $0x58] sm:$0xff]  }
 0x135   :  { %v3195_v62 = vld [vmem:[%s4403_s3 + $0xa0] ss:$24 sps:$4 sm:$0xff]  }
 0x137   :  { %1777 = vmatpush1.bf16.msra.mxu0 %v3126_v0  ;;  %1859 = vmatpush1.bf16.msra.mxu1 %v3129_v1  ;;  %v3200_v0 = vld [vmem:[%s4403_s3 + $0xd4] ss:$24 sps:$4 sm:$0xff]   ;;  %v3289_v1 = vld [vmem:[%s4405_s5 + $0x18] sm:$0xff]  }
 0x138   :  { %1778 = vmatprep.subr.bf16.mxu0 %v3134_v2  ;;  %1860 = vmatprep.subr.bf16.mxu1 %v3137_v3  ;;  %v3290_v2 = vld [vmem:[%s4405_s5 + $0x60] sm:$0xff]   ;;  %v3198_v3 = vld [vmem:[%s4403_s3 + $0xd0] ss:$24 sps:$4 sm:$0xff]  }
 0x13b   :  { %1779 = vmatpush1.bf16.msra.mxu0 %v3132_v4  ;;  %1861 = vmatpush1.bf16.msra.mxu1 %v3135_v5  ;;  %v3203_v4 = vld [vmem:[%s4403_s3 + $0x104] ss:$24 sps:$4 sm:$0xff]  }
 0x13c   :  { %1780 = vmatprep.subr.bf16.mxu0 %v3140_v6  ;;  %1862 = vmatprep.subr.bf16.mxu1 %v3143_v7  ;;  %v3291_v5 = vld [vmem:[%s4405_s5 + $0x20] sm:$0xff]   ;;  %v3292_v6 = vld [vmem:[%s4405_s5 + $0x68] sm:$0xff]  }
 0x13d   :  { %v3201_v7 = vld [vmem:[%s4403_s3 + $0x100] ss:$24 sps:$4 sm:$0xff]  }
 0x13f   :  { %1781 = vmatpush1.bf16.msra.mxu0 %v3138_v8  ;;  %1863 = vmatpush1.bf16.msra.mxu1 %v3141_v9  ;;  %v3206_v8 = vld [vmem:[%s4403_s3 + $0x134] ss:$24 sps:$4 sm:$0xff]  }
 0x140   :  { %1782 = vmatprep.subr.bf16.mxu0 %v3146_v10  ;;  %1864 = vmatprep.subr.bf16.mxu1 %v3149_v11  ;;  %v3293_v9 = vld [vmem:[%s4405_s5 + $0x28] sm:$0xff]   ;;  %v3209_v11 = vld [vmem:[%s4403_s3 + $0x164] ss:$24 sps:$4 sm:$0xff]  }
 0x141   :  { %v3204_v10 = vld [vmem:[%s4403_s3 + $0x130] ss:$24 sps:$4 sm:$0xff]  }
 0x143   :  { %1783 = vmatpush1.bf16.msra.mxu0 %v3144_v12  ;;  %1865 = vmatpush1.bf16.msra.mxu1 %v3147_v13  ;;  %v3207_v12 = vld [vmem:[%s4403_s3 + $0x160] ss:$24 sps:$4 sm:$0xff]   ;;  %v3212_v13 = vld [vmem:[%s4403_s3 + $0x194] ss:$24 sps:$4 sm:$0xff]  }
 0x144   :  { %1784 = vmatprep.subr.bf16.mxu0 %v3152_v14  ;;  %1866 = vmatprep.subr.bf16.mxu1 %v3155_v19  ;;  %v3210_v14 = vld [vmem:[%s4403_s3 + $0x190] ss:$24 sps:$4 sm:$0xff]   ;;  %v3215_v19 = vld [vmem:[%s4403_s3 + $0x1c4] ss:$24 sps:$4 sm:$0xff]  }
 0x147   :  { %1785 = vmatpush1.bf16.msra.mxu0 %v3150_v20  ;;  %1867 = vmatpush1.bf16.msra.mxu1 %v3153_v21  ;;  %v3213_v20 = vld [vmem:[%s4403_s3 + $0x1c0] ss:$24 sps:$4 sm:$0xff]   ;;  %v3218_v21 = vld [vmem:[%s4403_s3 + $0x1f4] ss:$24 sps:$4 sm:$0xff]  }
 0x148   :  { %1786 = vmatprep.subr.bf16.mxu0 %v3158_v22  ;;  %1868 = vmatprep.subr.bf16.mxu1 %v3161_v23  ;;  %v3216_v22 = vld [vmem:[%s4403_s3 + $0x1f0] ss:$24 sps:$4 sm:$0xff]   ;;  %v3221_v23 = vld [vmem:[%s4403_s3 + $0x224] ss:$24 sps:$4 sm:$0xff]  }
 0x14b   :  { %1787 = vmatpush1.bf16.msra.mxu0 %v3156_v24  ;;  %1869 = vmatpush1.bf16.msra.mxu1 %v3159_v25  ;;  %v3219_v24 = vld [vmem:[%s4403_s3 + $0x220] ss:$24 sps:$4 sm:$0xff]   ;;  %v3224_v25 = vld [vmem:[%s4403_s3 + $0x254] ss:$24 sps:$4 sm:$0xff]  }
 0x14c   :  { %1788 = vmatprep.subr.bf16.mxu0 %v3164_v26  ;;  %1870 = vmatprep.subr.bf16.mxu1 %v3167_v27  ;;  %v3222_v26 = vld [vmem:[%s4403_s3 + $0x250] ss:$24 sps:$4 sm:$0xff]   ;;  %v3227_v27 = vld [vmem:[%s4403_s3 + $0x284] ss:$24 sps:$4 sm:$0xff]  }
 0x14f   :  { %1789 = vmatpush1.bf16.msra.mxu0 %v3162_v30  ;;  %1871 = vmatpush1.bf16.msra.mxu1 %v3165_v31  ;;  %v3225_v30 = vld [vmem:[%s4403_s3 + $0x280] ss:$24 sps:$4 sm:$0xff]   ;;  %v3230_v31 = vld [vmem:[%s4403_s3 + $0x2b4] ss:$24 sps:$4 sm:$0xff]  }
 0x150   :  { %1790 = vmatprep.subr.bf16.mxu0 %v3170_v33  ;;  %1872 = vmatprep.subr.bf16.mxu1 %v3173_v34  ;;  %v3228_v33 = vld [vmem:[%s4403_s3 + $0x2b0] ss:$24 sps:$4 sm:$0xff]   ;;  %v3233_v34 = vld [vmem:[%s4403_s3 + $0x2e4] ss:$24 sps:$4 sm:$0xff]  }
 0x153   :  { %1791 = vmatpush1.bf16.msra.mxu0 %v3168_v36  ;;  %1873 = vmatpush1.bf16.msra.mxu1 %v3171_v37  ;;  %v3236_v36 = vld [vmem:[%s4403_s3 + $0x314] ss:$24 sps:$4 sm:$0xff]   ;;  %v3234_v37 = vld [vmem:[%s4403_s3 + $0x310] ss:$24 sps:$4 sm:$0xff]  }
 0x154   :  { %1792 = vmatprep.subr.bf16.mxu0 %v3176_v38  ;;  %1874 = vmatprep.subr.bf16.mxu1 %v3179_v17  ;;  %v3239_v38 = vld [vmem:[%s4403_s3 + $0x344] ss:$24 sps:$4 sm:$0xff]   ;;  %v3237_v17 = vld [vmem:[%s4403_s3 + $0x340] ss:$24 sps:$4 sm:$0xff]  }
 0x157   :  { %1793 = vmatpush1.bf16.msra.mxu0 %v3174_v40  ;;  %1875 = vmatpush1.bf16.msra.mxu1 %v3177_v41  ;;  %v3240_v40 = vld [vmem:[%s4403_s3 + $0x370] ss:$24 sps:$4 sm:$0xff]   ;;  %v3248_v41 = vld [vmem:[%s4403_s3 + $0x3d4] ss:$24 sps:$4 sm:$0xff]  }
 0x158   :  { %1794 = vmatprep.subr.bf16.mxu0 %v3182_v42  ;;  %1876 = vmatprep.subr.bf16.mxu1 %v3185_v44  ;;  %v3246_v42 = vld [vmem:[%s4403_s3 + $0x3d0] ss:$24 sps:$4 sm:$0xff]   ;;  %v3251_v44 = vld [vmem:[%s4403_s3 + $0x404] ss:$24 sps:$4 sm:$0xff]  }
 0x15b   :  { %1795 = vmatpush1.bf16.msra.mxu0 %v3180_v46  ;;  %1877 = vmatpush1.bf16.msra.mxu1 %v3183_v47  ;;  %v3294_v46 = vld [vmem:[%s4405_s5 + $0x70] sm:$0xff]  }
 0x15c   :  { %1887 = vmatprep.subr.bf16.mxu0 %v3188_v48  ;;  %2812 = vmatprep.subr.bf16.mxu1 %v3282_v52  ;;  %v3254_v47 = vld [vmem:[%s4403_s3 + $0x434] ss:$24 sps:$4 sm:$0xff]   ;;  %v3257_v52 = vld [vmem:[%s4403_s3 + $0x464] ss:$24 sps:$4 sm:$0xff]  }
 0x15d   :  { %v3295_v48 = vld [vmem:[%s4405_s5 + $0x30] sm:$0xff]  }
 0x15e   :  { %1797 = vmatmul.mubr.bf16.vlgmr.msra.gmra.mrb[4].mxu0 %v4023_v49  ;;  %1879 = vmatmul.mubr.bf16.vlgmr.msra.gmra.mrb[4].mxu1 %v4023_v49 }
 0x15f   :  { %1888 = vmatpush1.bf16.msra.mxu0 %v3186_v50  ;;  %1919 = vmatprep.mubr.bf16.mxu0 %v3811_v29  ;;  %v3286_v29 = vld [vmem:[%s4405_s5 + $0x50] sm:$0xff]  }
 0x160   :  { %1889 = vmatprep.subr.bf16.mxu0 %v3191_v51  ;;  %2813 = vmatpush3.bf16.msra.mxu1 %v3283_v53  ;;  %v3252_v50 = vld [vmem:[%s4403_s3 + $0x430] ss:$24 sps:$4 sm:$0xff]   ;;  %v3296_v51 = vld [vmem:[%s4405_s5 + $0x78] sm:$0xff]  }
 0x161   :  { %2814 = vmatprep.subr.bf16.mxu1 %v3284_v54  ;;  %v3297_v53 = vld [vmem:[%s4405_s5 + $0x38] sm:$0xff]  }
 0x162   :  { %v3255_v54 = vld [vmem:[%s4403_s3 + $0x460] ss:$24 sps:$4 sm:$0xff]  }
 0x163   :  { %1890 = vmatpush1.bf16.msra.mxu0 %v3189_v55  ;;  %v3298_v55 = vld [vmem:[%s4405_s5 + $0xc0] sm:$0xff]  }
 0x164   :  { %1891 = vmatprep.subr.bf16.mxu0 %v3194_v56  ;;  %2815 = vmatpush3.bf16.msra.mxu1 %v3285_v57  ;;  %v3260_v56 = vld [vmem:[%s4403_s3 + $0x494] ss:$24 sps:$4 sm:$0xff]   ;;  %v3258_v57 = vld [vmem:[%s4403_s3 + $0x490] ss:$24 sps:$4 sm:$0xff]  }
 0x165   :  { %2816 = vmatprep.subr.bf16.mxu1 %v3286_v29  ;;  %v3263_v29 = vld [vmem:[%s4403_s3 + $0x4c4] ss:$24 sps:$4 sm:$0xff]  }
 0x167   :  { %1892 = vmatpush1.bf16.msra.mxu0 %v3192_v58  ;;  %v3261_v58 = vld [vmem:[%s4403_s3 + $0x4c0] ss:$24 sps:$4 sm:$0xff]  }
 0x168   :  { %1893 = vmatprep.subr.bf16.mxu0 %v3197_v59  ;;  %2817 = vmatpush3.bf16.msra.mxu1 %v3287_v60  ;;  %v3266_v59 = vld [vmem:[%s4403_s3 + $0x4f4] ss:$24 sps:$4 sm:$0xff]   ;;  %v3264_v60 = vld [vmem:[%s4403_s3 + $0x4f0] ss:$24 sps:$4 sm:$0xff]  }
 0x169   :  { %2818 = vmatprep.subr.bf16.mxu1 %v3288_v61  ;;  %v3269_v61 = vld [vmem:[%s4403_s3 + $0x524] ss:$24 sps:$4 sm:$0xff]  }
 0x16b   :  { %1894 = vmatpush1.bf16.msra.mxu0 %v3195_v62  ;;  %v3267_v62 = vld [vmem:[%s4403_s3 + $0x520] ss:$24 sps:$4 sm:$0xff]  }
 0x16c   :  { %1895 = vmatprep.subr.bf16.mxu0 %v3200_v0  ;;  %2819 = vmatpush3.bf16.msra.mxu1 %v3289_v1  ;;  %v3272_v0 = vld [vmem:[%s4403_s3 + $0x554] ss:$24 sps:$4 sm:$0xff]   ;;  %v3270_v1 = vld [vmem:[%s4403_s3 + $0x550] ss:$24 sps:$4 sm:$0xff]  }
 0x16d   :  { %2820 = vmatprep.subr.bf16.mxu1 %v3290_v2  ;;  %v3275_v2 = vld [vmem:[%s4403_s3 + $0x584] ss:$24 sps:$4 sm:$0xff]  }
 0x16f   :  { %1896 = vmatpush1.bf16.msra.mxu0 %v3198_v3  ;;  %v3273_v3 = vld [vmem:[%s4403_s3 + $0x580] ss:$24 sps:$4 sm:$0xff]  }
 0x170   :  { %1897 = vmatprep.subr.bf16.mxu0 %v3203_v4  ;;  %2821 = vmatpush3.bf16.msra.mxu1 %v3291_v5  ;;  %v3278_v4 = vld [vmem:[%s4403_s3 + $0x5b4] ss:$24 sps:$4 sm:$0xff]   ;;  %v3276_v5 = vld [vmem:[%s4403_s3 + $0x5b0] ss:$24 sps:$4 sm:$0xff]  }
 0x171   :  { %2822 = vmatprep.subr.bf16.mxu1 %v3292_v6  ;;  %v3281_v6 = vld [vmem:[%s4403_s3 + $0x5e4] ss:$24 sps:$4 sm:$0xff]  }
 0x173   :  { %1898 = vmatpush1.bf16.msra.mxu0 %v3201_v7  ;;  %v3279_v7 = vld [vmem:[%s4403_s3 + $0x5e0] ss:$24 sps:$4 sm:$0xff]  }
 0x174   :  { %1899 = vmatprep.subr.bf16.mxu0 %v3206_v8  ;;  %2823 = vmatpush3.bf16.msra.mxu1 %v3293_v9  ;;  %v4274_v8 = vld [vmem:[%s4404_s4] sm:$0x3f] }
 0x175   :  { %2824 = vmatprep.subr.bf16.mxu1 %v3294_v46  ;;  %v736_v9 = vrot.slane %v4274_v8, %v111_v16 }
 0x177   :  { %1900 = vmatpush1.bf16.msra.mxu0 %v3204_v10  ;;  %v740_v10 = vrot.slane %v4274_v8, %v115_v18  ;;  %v3299_v18 = vld [vmem:[%s4405_s5 + $0x80] sm:$0xff]  }
 0x178   :  { %1901 = vmatprep.subr.bf16.mxu0 %v3209_v11  ;;  %2825 = vmatpush3.bf16.msra.mxu1 %v3295_v48  ;;  %v748_v11 = vrot.slane %v4274_v8, %v123_v43  ;;  %v3315_v48 = vld [vmem:[%s4405_s5 + $0x100] sm:$0xff]  }
 0x179   :  { %2826 = vmatprep.subr.bf16.mxu1 %v3296_v51  ;;  %v3316_v51 = vld [vmem:[%s4405_s5 + $0x148] sm:$0xff]  }
 0x17b   :  { %1902 = vmatpush1.bf16.msra.mxu0 %v3207_v12 }
 0x17c   :  { %1903 = vmatprep.subr.bf16.mxu0 %v3212_v13  ;;  %2827 = vmatpush3.bf16.msra.mxu1 %v3297_v53  ;;  %v3318_v53 = vld [vmem:[%s4405_s5 + $0x150] sm:$0xff]  }
 0x17d   :  { %2834 = vmatprep.subr.bf16.mxu1 %v3298_v55  ;;  %v3320_v55 = vld [vmem:[%s4405_s5 + $0x158] sm:$0xff]  }
 0x17f   :  { %1904 = vmatpush1.bf16.msra.mxu0 %v3210_v14 }
 0x180   :  { %1905 = vmatprep.subr.bf16.mxu0 %v3215_v19 }
 0x183   :  { %1906 = vmatpush1.bf16.msra.mxu0 %v3213_v20 }
 0x184   :  { %1907 = vmatprep.subr.bf16.mxu0 %v3218_v21 }
 0x187   :  { %1908 = vmatpush1.bf16.msra.mxu0 %v3216_v22 }
 0x188   :  { %1909 = vmatprep.subr.bf16.mxu0 %v3221_v23 }
 0x18b   :  { %1910 = vmatpush1.bf16.msra.mxu0 %v3219_v24 }
 0x18c   :  { %1911 = vmatprep.subr.bf16.mxu0 %v3224_v25 }
 0x18f   :  { %1912 = vmatpush1.bf16.msra.mxu0 %v3222_v26 }
 0x190   :  { %1913 = vmatprep.subr.bf16.mxu0 %v3227_v27 }
 0x193   :  { %1914 = vmatpush1.bf16.msra.mxu0 %v3225_v30 }
 0x194   :  { %1915 = vmatprep.subr.bf16.mxu0 %v3230_v31  ;;  %v3300_v31 = vld [vmem:[%s4405_s5 + $0xc8] sm:$0xff]  }
 0x197   :  { %1916 = vmatpush1.bf16.msra.mxu0 %v3228_v33 }
 0x198   :  { %1917 = vmatprep.subr.bf16.mxu0 %v3233_v34  ;;  %v3301_v34 = vld [vmem:[%s4405_s5 + $0x88] sm:$0xff]  }
 0x19b   :  { %1918 = vmatpush1.bf16.msra.mxu0 %v3231_v35  ;;  %v3302_v35 = vld [vmem:[%s4405_s5 + $0xd0] sm:$0xff]  }
 0x19c   :  { %1928 = vmatprep.subr.bf16.mxu0 %v3236_v36  ;;  %v3303_v36 = vld [vmem:[%s4405_s5 + $0x90] sm:$0xff]  }
 0x19e   :  { %1920 = vmatmul.mubr.bf16.vlgmr.msra.gmra.mrb[8].mxu0 %v3819_v32  ;;  %v3245_v32 = vld [vmem:[%s4403_s3 + $0x3a4] ss:$24 sps:$4 sm:$0xff]  }
 0x19f   :  { %1929 = vmatpush1.bf16.msra.mxu0 %v3234_v37  ;;  %1960 = vmatprep.mubr.bf16.mxu0 %v3897_v63  ;;  %v3243_v63 = vld [vmem:[%s4403_s3 + $0x3a0] ss:$24 sps:$4 sm:$0xff]  }
 0x1a0   :  { %1930 = vmatprep.subr.bf16.mxu0 %v3239_v38  ;;  %v3304_v37 = vld [vmem:[%s4405_s5 + $0xd8] sm:$0xff]  }
 0x1a1   :  { %v3305_v38 = vld [vmem:[%s4405_s5 + $0x98] sm:$0xff]  }
 0x1a3   :  { %1931 = vmatpush1.bf16.msra.mxu0 %v3237_v17  ;;  %v3306_v17 = vld [vmem:[%s4405_s5 + $0xe0] sm:$0xff]  }
 0x1a4   :  { %1932 = vmatprep.subr.bf16.mxu0 %v3242_v39  ;;  %v3307_v39 = vld [vmem:[%s4405_s5 + $0xa0] sm:$0xff]  }
 0x1a7   :  { %1933 = vmatpush1.bf16.msra.mxu0 %v3240_v40  ;;  %v3308_v40 = vld [vmem:[%s4405_s5 + $0xe8] sm:$0xff]  }
 0x1a8   :  { %1934 = vmatprep.subr.bf16.mxu0 %v3245_v32  ;;  %v3309_v32 = vld [vmem:[%s4405_s5 + $0xa8] sm:$0xff]  }
 0x1ab   :  { %1935 = vmatpush1.bf16.msra.mxu0 %v3243_v63  ;;  %v744_v63 = vrot.slane %v4274_v8, %v119_v28  ;;  %v3313_v28 = vld [vmem:[%s4405_s5 + $0xb8] sm:$0xff]  }
 0x1ac   :  { %1936 = vmatprep.subr.bf16.mxu0 %v3248_v41  ;;  %v3310_v41 = vld [vmem:[%s4405_s5 + $0xf0] sm:$0xff]  }
 0x1af   :  { %1937 = vmatpush1.bf16.msra.mxu0 %v3246_v42  ;;  %v3311_v42 = vld [vmem:[%s4405_s5 + $0xb0] sm:$0xff]  }
 0x1b0   :  { %1938 = vmatprep.subr.bf16.mxu0 %v3251_v44 }
 0x1b3   :  { %1939 = vmatpush1.bf16.msra.mxu0 %v3249_v45  ;;  %v3312_v45 = vld [vmem:[%s4405_s5 + $0xf8] sm:$0xff]  }
 0x1b4   :  { %1940 = vmatprep.subr.bf16.mxu0 %v3254_v47  ;;  %v3314_v47 = vld [vmem:[%s4405_s5 + $0x140] sm:$0xff]  }
 0x1b7   :  { %1941 = vmatpush1.bf16.msra.mxu0 %v3252_v50 }
 0x1b8   :  { %1942 = vmatprep.subr.bf16.mxu0 %v3257_v52  ;;  %v3317_v52 = vld [vmem:[%s4405_s5 + $0x108] sm:$0xff]  }
 0x1bb   :  { %1943 = vmatpush1.bf16.msra.mxu0 %v3255_v54  ;;  %v3319_v54 = vld [vmem:[%s4405_s5 + $0x110] sm:$0xff]  }
 0x1bc   :  { %1944 = vmatprep.subr.bf16.mxu0 %v3260_v56  ;;  %v3321_v56 = vld [vmem:[%s4405_s5 + $0x118] sm:$0xff]  }
 0x1bf   :  { %1945 = vmatpush1.bf16.msra.mxu0 %v3258_v57  ;;  %v3322_v57 = vld [vmem:[%s4405_s5 + $0x160] sm:$0xff]  }
 0x1c0   :  { %1946 = vmatprep.subr.bf16.mxu0 %v3263_v29  ;;  %v3323_v29 = vld [vmem:[%s4405_s5 + $0x120] sm:$0xff]  }
 0x1c3   :  { %1947 = vmatpush1.bf16.msra.mxu0 %v3261_v58  ;;  %v3324_v58 = vld [vmem:[%s4405_s5 + $0x168] sm:$0xff]  }
 0x1c4   :  { %1948 = vmatprep.subr.bf16.mxu0 %v3266_v59  ;;  %v3325_v59 = vld [vmem:[%s4405_s5 + $0x128] sm:$0xff]  }
 0x1c7   :  { %1949 = vmatpush1.bf16.msra.mxu0 %v3264_v60  ;;  %v3326_v60 = vld [vmem:[%s4405_s5 + $0x170] sm:$0xff]  }
 0x1c8   :  { %1950 = vmatprep.subr.bf16.mxu0 %v3269_v61  ;;  %v3327_v61 = vld [vmem:[%s4405_s5 + $0x130] sm:$0xff]  }
 0x1cb   :  { %1951 = vmatpush1.bf16.msra.mxu0 %v3267_v62  ;;  %v3328_v62 = vld [vmem:[%s4405_s5 + $0x178] sm:$0xff]  }
 0x1cc   :  { %1952 = vmatprep.subr.bf16.mxu0 %v3272_v0  ;;  %v3329_v0 = vld [vmem:[%s4405_s5 + $0x138] sm:$0xff]  }
 0x1cf   :  { %1953 = vmatpush1.bf16.msra.mxu0 %v3270_v1  ;;  %v751_v1 = vsub.s32 4, %v3429_v15 }
 0x1d0   :  { %1954 = vmatprep.subr.bf16.mxu0 %v3275_v2  ;;  %v755_v2 = vsub.s32 5, %v3429_v15 }
 0x1d3   :  { %1955 = vmatpush1.bf16.msra.mxu0 %v3273_v3  ;;  %v752_v3 = vrot.slane %v4274_v8, %v751_v1 }
 0x1d4   :  { %1956 = vmatprep.subr.bf16.mxu0 %v3278_v4  ;;  %v756_v4 = vrot.slane %v4274_v8, %v755_v2  ;;  %v2763_v8 = vld [vmem:[%s4406_s6] ss:$0 sm:$0xff] }
 0x1d7   :  { %1957 = vmatpush1.bf16.msra.mxu0 %v3276_v5 }
 0x1d8   :  { %1958 = vmatprep.subr.bf16.mxu0 %v3281_v6 }
 0x1db   :  { %1959 = vmatpush1.bf16.msra.mxu0 %v3279_v7 }
 0x1de   :  { %1961 = vmatmul.mubr.bf16.vlgmr.msra.gmra.mrb[8].mxu0 %v4023_v49 }
 0x231   :  { %v1798_v12 = vpop.f32.mrb[4].mxu0  ;;  %v1880_v13 = vpop.f32.mrb[4].mxu1 }
 0x232   :  { %v2878_v49 = vadd.f32 %v1798_v12, %v736_v9  ;;  %v1800_v14 = vpop.f32.mrb[5].mxu0  ;;  %v1882_v19 = vpop.f32.mrb[5].mxu1  ;;  %v2880_v44 = vadd.f32 %v1880_v13, %v744_v63 }
 0x233   :  { %v2879_v20 = vadd.f32 %v1800_v14, %v740_v10  ;;  %v2881_v21 = vadd.f32 %v1882_v19, %v748_v11  ;;  %v1802_v22 = vpop.f32.mrb[6].mxu0  ;;  %v1884_v23 = vpop.f32.mrb[6].mxu1 }
 0x234   :  { %v1969_v24 = vmax.f32 %v2878_v49, 0.0  ;;  %v1803_v25 = vpop.f32.mrb[7].mxu0  ;;  %v1885_v16 = vpop.f32.mrb[7].mxu1  ;;  %v1971_v46 = vmax.f32 %v2880_v44, 0.0 }
 0x235   :  { %v1970_v26 = vmax.f32 %v2879_v20, 0.0  ;;  %v1972_v27 = vmax.f32 %v2881_v21, 0.0 }
 0x236   :  { %v1975_v43 = vpack.c.bf16 %v1969_v24, %v1969_v24  ;;  %v1977_v50 = vpack.c.bf16 %v1971_v46, %v1971_v46 }
 0x237   :  { %v1976_v30 = vpack.c.bf16 %v1970_v26, %v1970_v26  ;;  %v1978_v33 = vpack.c.bf16 %v1972_v27, %v1972_v27 }
 0x239   :  { %2404 = vmatprep.mubr.bf16.mxu1 %v1976_v30 }
 0x23a   :  { %2405 = vmatmul.mubr.bf16.vlgmr.msra.gmra.mrb[8].mxu1 %v1975_v43 }
 0x23b   :  { %2835 = vmatpush3.bf16.msra.mxu1 %v3299_v18  ;;  %2444 = vmatprep.mubr.bf16.mxu1 %v1978_v33 }
 0x23c   :  { %2836 = vmatprep.subr.bf16.mxu1 %v3300_v31 }
 0x23f   :  { %2837 = vmatpush3.bf16.msra.mxu1 %v3301_v34 }
 0x240   :  { %2838 = vmatprep.subr.bf16.mxu1 %v3302_v35 }
 0x243   :  { %2839 = vmatpush3.bf16.msra.mxu1 %v3303_v36 }
 0x244   :  { %2840 = vmatprep.subr.bf16.mxu1 %v3304_v37 }
 0x247   :  { %2841 = vmatpush3.bf16.msra.mxu1 %v3305_v38 }
 0x248   :  { %2842 = vmatprep.subr.bf16.mxu1 %v3306_v17 }
 0x24b   :  { %2843 = vmatpush3.bf16.msra.mxu1 %v3307_v39 }
 0x24c   :  { %2844 = vmatprep.subr.bf16.mxu1 %v3308_v40 }
 0x24f   :  { %2845 = vmatpush3.bf16.msra.mxu1 %v3309_v32 }
 0x250   :  { %2846 = vmatprep.subr.bf16.mxu1 %v3310_v41 }
 0x253   :  { %2847 = vmatpush3.bf16.msra.mxu1 %v3311_v42 }
 0x254   :  { %2848 = vmatprep.subr.bf16.mxu1 %v3312_v45 }
 0x257   :  { %2849 = vmatpush3.bf16.msra.mxu1 %v3313_v28 }
 0x258   :  { %2856 = vmatprep.subr.bf16.mxu1 %v3314_v47 }
 0x25a   :  { %2445 = vmatmul.mubr.bf16.vlgmr.msra.gmra.mrb[12].mxu1 %v1977_v50 }
 0x25b   :  { %2857 = vmatpush3.bf16.msra.mxu1 %v3315_v48 }
 0x25c   :  { %2858 = vmatprep.subr.bf16.mxu1 %v3316_v51 }
 0x25f   :  { %2859 = vmatpush3.bf16.msra.mxu1 %v3317_v52 }
 0x260   :  { %2860 = vmatprep.subr.bf16.mxu1 %v3318_v53 }
 0x263   :  { %2861 = vmatpush3.bf16.msra.mxu1 %v3319_v54 }
 0x264   :  { %2862 = vmatprep.subr.bf16.mxu1 %v3320_v55 }
 0x267   :  { %2863 = vmatpush3.bf16.msra.mxu1 %v3321_v56 }
 0x268   :  { %2864 = vmatprep.subr.bf16.mxu1 %v3322_v57 }
 0x26b   :  { %2865 = vmatpush3.bf16.msra.mxu1 %v3323_v29 }
 0x26c   :  { %2866 = vmatprep.subr.bf16.mxu1 %v3324_v58 }
 0x26f   :  { %2867 = vmatpush3.bf16.msra.mxu1 %v3325_v59 }
 0x270   :  { %2868 = vmatprep.subr.bf16.mxu1 %v3326_v60 }
 0x273   :  { %2869 = vmatpush3.bf16.msra.mxu1 %v3327_v61 }
 0x274   :  { %2870 = vmatprep.subr.bf16.mxu1 %v3328_v62 }
 0x277   :  { %2871 = vmatpush3.bf16.msra.mxu1 %v3329_v0 }
 0x2b1   :  { %v1962_v5 = vpop.f32.mrb[8].mxu0 }
 0x2b2   :  { %v2882_v6 = vadd.f32 %v1962_v5, %v752_v3  ;;  %v1964_v7 = vpop.f32.mrb[9].mxu0 }
 0x2b3   :  { %v2883_v9 = vadd.f32 %v1964_v7, %v756_v4  ;;  %v1966_v10 = vpop.f32.mrb[10].mxu0 }
 0x2b4   :  { %v1973_v11 = vmax.f32 %v2882_v6, 0.0  ;;  %v1967_v12 = vpop.f32.mrb[11].mxu0 }
 0x2b5   :  { %v1974_v13 = vmax.f32 %v2883_v9, 0.0 }
 0x2b6   :  { %v1979_v14 = vpack.c.bf16 %v1973_v11, %v1973_v11 }
 0x2b7   :  { %v1980_v49 = vpack.c.bf16 %v1974_v13, %v1974_v13 }
 0x2b9   :  { %2484 = vmatprep.mubr.bf16.mxu1 %v1980_v49 }
 0x2ba   :  { %2485 = vmatmul.mubr.bf16.vlgmr.msra.gmra.mrb[16].mxu1 %v1979_v14 }
 0x30d   :  { %v2828_v19 = vpop.f32.mrb[8].mxu1 }
 0x30e   :  { %v2829_v20 = vpop.f32.mrb[9].mxu1 }
 0x30f   :  { %v2830_v21 = vadd.f32 %v2829_v20, %v2828_v19  ;;  %v2831_v15 = vpop.f32.mrb[10].mxu1 }
 0x310   :  { %v2832_v22 = vpop.f32.mrb[11].mxu1 }
 0x311   :  { %v2407_v25 = vadd.f32 %v2830_v21, %v2763_v8 }
 0x32d   :  { %v2850_v23 = vpop.f32.mrb[12].mxu1 }
 0x32e   :  { %v2851_v24 = vpop.f32.mrb[13].mxu1 }
 0x32f   :  { %v2852_v16 = vadd.f32 %v2851_v24, %v2850_v23  ;;  %v2853_v26 = vpop.f32.mrb[14].mxu1 }
 0x330   :  { %v2854_v27 = vpop.f32.mrb[15].mxu1 }
 0x331   :  { %v2447_v30 = vadd.f32 %v2852_v16, %v2407_v25 }
 0x38d   :  { %v2872_v18 = vpop.f32.mrb[16].mxu1 }
 0x38e   :  { %v2873_v43 = vpop.f32.mrb[17].mxu1 }
 0x38f   :  { %v2874_v31 = vadd.f32 %v2873_v43, %v2872_v18  ;;  %v2875_v33 = vpop.f32.mrb[18].mxu1 }
 0x390   :  { %v2876_v34 = vpop.f32.mrb[19].mxu1 }
 0x391   :  { %v2487_v35 = vadd.f32 %v2874_v31, %v2447_v30 }
 0x393   :  { %2492 = vst [vmem:[#allocation2] sm:$0x3] %v2487_v35 }
 0x394   :  { %3341 = shalt.err (!%p3338_p4)
}
 0x395   :  { %s3342_s30 = scalar_lea.hbm %s4407_s7, 32 }
 0x396   :  { %p3343_p5 = scmp.ne.s32.totalorder %s4407_s7, %s3342_s30  ;;  %p3346_p6 = scmp.lt.u32.totalorder %s3342_s30, %s4407_s7 }
 0x398   :  { %p3348_p7 = pnand %p3346_p6, %p3343_p5 }
 0x39a   :  { %3351 = shalt.err (!%p3348_p7)
}
 0x39b   :  { %2502 = dma.vmem_to_hbm [thread:$0]  %s2500_s27, 32, %s4407_s7, [#allocation3]  }
 0x39c   :  { %3352 = dma.done.wait [#allocation3], 32  }
 0x39d   :  { %3353 = vsyncadd [#allocation3], 4294967264 }
 0x39e   :  { %2506 = vsyncpa [#allocation3], 1 }

</bundles_post_ra>
